<compile_context>
chip_gen: v7x
topology: tpu7x:2x2x1
jax: 0.10.0
libtpu: 0.0.40
codegen_flags: <defaults>
</compile_context>

<pallas_src>
import functools

import jax
import jax.numpy as jnp
from jax.experimental import pallas as pl
from jax.experimental.pallas import tpu as pltpu

_VMEM_LIMIT_BYTES = 48 * 1024 * 1024   # under v7x's 64 MiB physical VMEM
_NEG_BIG = -1e30                       # logit fill for padded vocab columns


def _round_up(a, b):
    return (a + b - 1) // b * b


def _lse_kernel(x_ref, w_ref, b_ref, lse_ref, m_ref, l_ref):
    # grid = (row_tiles, vocab_tiles); vocab (reduction) axis is innermost.
    j = pl.program_id(1)

    @pl.when(j == 0)
    def _():
        m_ref[...] = jnp.full_like(m_ref[...], -jnp.inf)
        l_ref[...] = jnp.zeros_like(l_ref[...])

    s = jnp.dot(x_ref[...], w_ref[...], preferred_element_type=jnp.float32)
    s = s + b_ref[...]                                   # bias already f32
    m_prev = m_ref[...]
    m_new = jnp.maximum(m_prev, jnp.max(s, axis=-1, keepdims=True))
    l_ref[...] = (l_ref[...] * jnp.exp(m_prev - m_new)
                  + jnp.sum(jnp.exp(s - m_new), axis=-1, keepdims=True))
    m_ref[...] = m_new

    @pl.when(j == pl.num_programs(1) - 1)
    def _():
        lse_ref[...] = m_ref[...] + jnp.log(l_ref[...])


def _logprob_kernel(x_ref, w_ref, b_ref, lse_ref, o_ref):
    # grid = (vocab_tiles, row_tiles): weight tile is stationary across the
    # inner row loop (block index unchanged -> no re-DMA).
    s = jnp.dot(x_ref[...], w_ref[...], preferred_element_type=jnp.float32)
    o_ref[...] = (s + b_ref[...] - lse_ref[...]).astype(o_ref.dtype)


def _pick_tiles(n, d_model, vocab):
    """Adaptive (tm, tn): big tiles for fewer weight re-reads, bounded VMEM."""
    # Lane-dense vocab tile: shrink until double-buffered bf16 weight tile
    # stays <= 16 MiB (robust to large d_model).
    tn = 2048
    while tn > 256 and 2 * (d_model * tn * 2) > 16 * 1024 * 1024:
        tn //= 2
    tn = max(128, min(tn, _round_up(vocab, 128)))
    # Row tile: large (halves pass-1 weight traffic vs tm=256) but keep the
    # x tiles + f32 logit temporaries + output tile bounded.
    tm = 512
    while tm > 128 and (2 * (tm * d_model * 2)
                        + 3 * (tm * tn * 4)) > 24 * 1024 * 1024:
        tm //= 2
    tm = max(8, min(tm, _round_up(n, 8)))
    return tm, tn


@functools.partial(
    jax.jit, static_argnames=("tm", "tn", "out_dtype", "compute_dtype"))
def generator_forward(x, w_t, bias, *, tm=None, tn=None, out_dtype=None,
                      compute_dtype=jnp.bfloat16):
    """log_softmax(x @ w_t + bias, axis=-1).

    x: [B, S, d_model]; w_t: [d_model, vocab] (pre-transposed Linear weight);
    bias: [vocab].
    """
    bsz, seq, d_model = x.shape
    assert w_t.shape[0] == d_model
    vocab = w_t.shape[1]
    n = bsz * seq
    out_dtype = x.dtype if out_dtype is None else out_dtype

    auto_tm, auto_tn = _pick_tiles(n, d_model, vocab)
    tm = auto_tm if tm is None else max(8, min(tm, _round_up(n, 8)))
    tn = auto_tn if tn is None else max(128, min(tn, _round_up(vocab, 128)))

    n_pad = _round_up(n, tm)
    v_pad = _round_up(vocab, tn)

    x2d = x.reshape(n, d_model).astype(compute_dtype)
    if n_pad != n:          # padded rows just see logits == bias; sliced later
        x2d = jnp.pad(x2d, ((0, n_pad - n), (0, 0)))
    w = w_t.astype(compute_dtype)
    b2d = bias.astype(jnp.float32).reshape(1, vocab)
    if v_pad != vocab:      # padded columns get ~-inf logits -> no effect on lse
        w = jnp.pad(w, ((0, 0), (0, v_pad - vocab)))
        b2d = jnp.pad(b2d, ((0, 0), (0, v_pad - vocab)), constant_values=_NEG_BIG)

    row_tiles = n_pad // tm
    vocab_tiles = v_pad // tn

    # ---- Pass 1: per-row online logsumexp (rows outer, vocab inner). ----
    lse = pl.pallas_call(
        _lse_kernel,
        out_shape=jax.ShapeDtypeStruct((n_pad, 1), jnp.float32),
        grid_spec=pltpu.PrefetchScalarGridSpec(
            num_scalar_prefetch=0,
            grid=(row_tiles, vocab_tiles),
            in_specs=[pl.BlockSpec((tm, d_model), lambda i, j: (i, 0)),
                      pl.BlockSpec((d_model, tn), lambda i, j: (0, j)),
                      pl.BlockSpec((1, tn), lambda i, j: (0, j))],
            out_specs=pl.BlockSpec((tm, 1), lambda i, j: (i, 0)),
            scratch_shapes=[pltpu.VMEM((tm, 1), jnp.float32),
                            pltpu.VMEM((tm, 1), jnp.float32)],
        ),
        compiler_params=pltpu.CompilerParams(
            dimension_semantics=("parallel", "arbitrary"),
            vmem_limit_bytes=_VMEM_LIMIT_BYTES,
        ),
    )(x2d, w, b2d)

    # ---- Pass 2: weight-stationary log-prob writeback (vocab outer). ----
    out = pl.pallas_call(
        _logprob_kernel,
        out_shape=jax.ShapeDtypeStruct((n_pad, v_pad), out_dtype),
        grid_spec=pltpu.PrefetchScalarGridSpec(
            num_scalar_prefetch=0,
            grid=(vocab_tiles, row_tiles),
            in_specs=[pl.BlockSpec((tm, d_model), lambda j, i: (i, 0)),
                      pl.BlockSpec((d_model, tn), lambda j, i: (0, j)),
                      pl.BlockSpec((1, tn), lambda j, i: (0, j)),
                      pl.BlockSpec((tm, 1), lambda j, i: (i, 0))],
            out_specs=pl.BlockSpec((tm, tn), lambda j, i: (i, j)),
        ),
        compiler_params=pltpu.CompilerParams(
            dimension_semantics=("parallel", "parallel"),
            vmem_limit_bytes=_VMEM_LIMIT_BYTES,
        ),
    )(x2d, w, b2d, lse)

    return out[:n, :vocab].reshape(bsz, seq, vocab)


if __name__ == "__main__":
    batch, seq, d_model, vocab = 2, 8, 32, 128

    key = jax.random.PRNGKey(0)
    kx, kw, kb = jax.random.split(key, 3)

    x = jax.random.normal(kx, (batch, seq, d_model), dtype=jnp.float32)
    # nn.Linear-style init: U(-1/sqrt(d_model), 1/sqrt(d_model))
    bound = 1.0 / (d_model ** 0.5)
    weight = jax.random.uniform(kw, (vocab, d_model),
                                minval=-bound, maxval=bound, dtype=jnp.float32)
    bias = jax.random.uniform(kb, (vocab,),
                              minval=-bound, maxval=bound, dtype=jnp.float32)

    # Parameter prep done once, outside the per-call jit path.
    w_t = jnp.asarray(weight.T)

    out = generator_forward(x, w_t, bias)
    jax.block_until_ready(out)

    # Reference (f32); kernel uses bf16 MXU inputs with f32 accumulation,
    # hence the slightly loosened tolerance.
    ref = jax.nn.log_softmax(x @ weight.T + bias, axis=-1)
    assert out.shape == (batch, seq, vocab)
    assert out.dtype == x.dtype
    assert jnp.allclose(jnp.exp(out.astype(jnp.float32)).sum(-1), 1.0, atol=1e-2)
    assert jnp.allclose(out, ref, atol=2e-2, rtol=2e-2)

    # Ragged shapes exercise the row/vocab padding path.
    x2 = jax.random.normal(kx, (batch, 5, d_model), dtype=jnp.float32)
    w2 = jax.random.uniform(kw, (100, d_model),
                            minval=-bound, maxval=bound, dtype=jnp.float32)
    b2 = jax.random.uniform(kb, (100,),
                            minval=-bound, maxval=bound, dtype=jnp.float32)
    out2 = generator_forward(x2, jnp.asarray(w2.T), b2)
    jax.block_until_ready(out2)
    ref2 = jax.nn.log_softmax(x2 @ w2.T + b2, axis=-1)
    assert out2.shape == (batch, 5, 100)
    assert jnp.allclose(out2, ref2, atol=2e-2, rtol=2e-2)

    # Multi-tile grid (explicit small tiles) exercises the online-lse
    # accumulation across vocab tiles and the weight-stationary pass-2 order.
    x3 = jax.random.normal(kx, (4, 16, 64), dtype=jnp.float32)
    bound3 = 1.0 / (64 ** 0.5)
    w3 = jax.random.uniform(kw, (512, 64),
                            minval=-bound3, maxval=bound3, dtype=jnp.float32)
    b3 = jax.random.uniform(kb, (512,),
                            minval=-bound3, maxval=bound3, dtype=jnp.float32)
    out3 = generator_forward(x3, jnp.asarray(w3.T), b3, tm=16, tn=128)
    jax.block_until_ready(out3)
    ref3 = jax.nn.log_softmax(x3 @ w3.T + b3, axis=-1)
    assert out3.shape == (4, 16, 512)
    assert jnp.allclose(out3, ref3, atol=2e-2, rtol=2e-2)

    print("KERNEL_OK")
</pallas_src>

<mosaic_0001>
module attributes {stable_mosaic.version = 11 : i64} {
  func.func @_logprob_kernel(%arg0: i32, %arg1: i32, %arg2: memref<16x32xbf16, #tpu.memory_space<vmem>>, %arg3: memref<32x128xbf16, #tpu.memory_space<vmem>>, %arg4: memref<1x128xf32, #tpu.memory_space<vmem>>, %arg5: memref<16x1xf32, #tpu.memory_space<vmem>>, %arg6: memref<16x128xf32, #tpu.memory_space<vmem>>) attributes {dimension_semantics = [#tpu.dimension_semantics<parallel>, #tpu.dimension_semantics<parallel>], iteration_bounds = array<i64: 1, 1>, scalar_prefetch = 0 : i64, scratch_operands = 0 : i64, tpu.core_type = #tpu.core_type<tc>, window_params = [{transform_indices = @transform_0, window_bounds = array<i64: 16, 32>}, {transform_indices = @transform_1, window_bounds = array<i64: 32, 128>}, {transform_indices = @transform_2, window_bounds = array<i64: 1, 128>}, {transform_indices = @transform_3, window_bounds = array<i64: 16, 1>}, {transform_indices = @transform_4, window_bounds = array<i64: 16, 128>}]} {
    %c0 = arith.constant 0 : index
    %c0_0 = arith.constant 0 : index
    %0 = vector.load %arg2[%c0, %c0_0] : memref<16x32xbf16, #tpu.memory_space<vmem>>, vector<16x32xbf16>
    %c0_1 = arith.constant 0 : index
    %c0_2 = arith.constant 0 : index
    %1 = vector.load %arg3[%c0_1, %c0_2] : memref<32x128xbf16, #tpu.memory_space<vmem>>, vector<32x128xbf16>
    %cst = arith.constant dense<0.000000e+00> : vector<16x128xf32>
    %2 = tpu.matmul %0, %1, %cst {dimension_numbers = #tpu.dot_dimension_numbers<[1], [0], [0], [1], [0, 0, 1, 1], [], []>} : vector<16x32xbf16>, vector<32x128xbf16>, vector<16x128xf32> -> vector<16x128xf32>
    %c0_3 = arith.constant 0 : index
    %c0_4 = arith.constant 0 : index
    %3 = vector.load %arg4[%c0_3, %c0_4] : memref<1x128xf32, #tpu.memory_space<vmem>>, vector<1x128xf32>
    %4 = vector.broadcast %3 : vector<1x128xf32> to vector<16x128xf32>
    %5 = arith.addf %2, %4 : vector<16x128xf32>
    %c0_5 = arith.constant 0 : index
    %c0_6 = arith.constant 0 : index
    %6 = vector.load %arg5[%c0_5, %c0_6] : memref<16x1xf32, #tpu.memory_space<vmem>>, vector<16x1xf32>
    %7 = vector.broadcast %6 : vector<16x1xf32> to vector<16x128xf32>
    %8 = arith.subf %5, %7 : vector<16x128xf32>
    %c0_7 = arith.constant 0 : index
    %c0_8 = arith.constant 0 : index
    %9 = vector.load %arg6[%c0_7, %c0_8] : memref<16x128xf32, #tpu.memory_space<vmem>>, vector<16x128xf32>
    tpu.vector_store %arg6[%c0_7, %c0_8], %8 {strides = array<i32>} : memref<16x128xf32, #tpu.memory_space<vmem>>, vector<16x128xf32>,
    return
  }
  func.func @transform_0(%arg0: i32, %arg1: i32) -> (i32, i32) {
    %c0_i32 = arith.constant 0 : i32
    %c0_i32_0 = arith.constant 0 : i32
    return %arg1, %c0_i32 : i32, i32
  }
  func.func @transform_1(%arg0: i32, %arg1: i32) -> (i32, i32) {
    %c0_i32 = arith.constant 0 : i32
    %c0_i32_0 = arith.constant 0 : i32
    return %c0_i32, %arg0 : i32, i32
  }
  func.func @transform_2(%arg0: i32, %arg1: i32) -> (i32, i32) {
    %c0_i32 = arith.constant 0 : i32
    %c0_i32_0 = arith.constant 0 : i32
    return %c0_i32, %arg0 : i32, i32
  }
  func.func @transform_3(%arg0: i32, %arg1: i32) -> (i32, i32) {
    %c0_i32 = arith.constant 0 : i32
    %c0_i32_0 = arith.constant 0 : i32
    return %arg1, %c0_i32 : i32, i32
  }
  func.func @transform_4(%arg0: i32, %arg1: i32) -> (i32, i32) {
    %c0_i32 = arith.constant 0 : i32
    return %arg1, %arg0 : i32, i32
  }
}

module attributes {stable_mosaic.version = 11 : i64} {
  func.func @_lse_kernel(%arg0: i32, %arg1: i32, %arg2: memref<16x32xbf16, #tpu.memory_space<vmem>>, %arg3: memref<32x128xbf16, #tpu.memory_space<vmem>>, %arg4: memref<1x128xf32, #tpu.memory_space<vmem>>, %arg5: memref<16x1xf32, #tpu.memory_space<vmem>>, %arg6: memref<16x1xf32, #tpu.memory_space<vmem>>, %arg7: memref<16x1xf32, #tpu.memory_space<vmem>>) attributes {dimension_semantics = [#tpu.dimension_semantics<parallel>, #tpu.dimension_semantics<arbitrary>], iteration_bounds = array<i64: 1, 1>, scalar_prefetch = 0 : i64, scratch_operands = 2 : i64, tpu.core_type = #tpu.core_type<tc>, window_params = [{transform_indices = @transform_0, window_bounds = array<i64: 16, 32>}, {transform_indices = @transform_1, window_bounds = array<i64: 32, 128>}, {transform_indices = @transform_2, window_bounds = array<i64: 1, 128>}, {transform_indices = @transform_3, window_bounds = array<i64: 16, 1>}]} {
    %c0_i32 = arith.constant 0 : i32
    %0 = arith.cmpi eq, %arg1, %c0_i32 : i32
    %1 = arith.extui %0 : i1 to i32
    %c0_i32_0 = arith.constant 0 : i32
    %2 = arith.cmpi ne, %1, %c0_i32_0 : i32
    scf.if %2 {
      %cst_18 = arith.constant 0xFF800000 : f32
      %28 = vector.broadcast %cst_18 : f32 to vector<16x1xf32>
      %c0_19 = arith.constant 0 : index
      %c0_20 = arith.constant 0 : index
      %29 = vector.load %arg6[%c0_19, %c0_20] : memref<16x1xf32, #tpu.memory_space<vmem>>, vector<16x1xf32>
      tpu.vector_store %arg6[%c0_19, %c0_20], %28 {strides = array<i32>} : memref<16x1xf32, #tpu.memory_space<vmem>>, vector<16x1xf32>,
      %cst_21 = arith.constant 0.000000e+00 : f32
      %30 = vector.broadcast %cst_21 : f32 to vector<16x1xf32>
      %c0_22 = arith.constant 0 : index
      %c0_23 = arith.constant 0 : index
      %31 = vector.load %arg7[%c0_22, %c0_23] : memref<16x1xf32, #tpu.memory_space<vmem>>, vector<16x1xf32>
      tpu.vector_store %arg7[%c0_22, %c0_23], %30 {strides = array<i32>} : memref<16x1xf32, #tpu.memory_space<vmem>>, vector<16x1xf32>,
    } else {
    }
    %c0 = arith.constant 0 : index
    %c0_1 = arith.constant 0 : index
    %3 = vector.load %arg2[%c0, %c0_1] : memref<16x32xbf16, #tpu.memory_space<vmem>>, vector<16x32xbf16>
    %c0_2 = arith.constant 0 : index
    %c0_3 = arith.constant 0 : index
    %4 = vector.load %arg3[%c0_2, %c0_3] : memref<32x128xbf16, #tpu.memory_space<vmem>>, vector<32x128xbf16>
    %cst = arith.constant dense<0.000000e+00> : vector<16x128xf32>
    %5 = tpu.matmul %3, %4, %cst {dimension_numbers = #tpu.dot_dimension_numbers<[1], [0], [0], [1], [0, 0, 1, 1], [], []>} : vector<16x32xbf16>, vector<32x128xbf16>, vector<16x128xf32> -> vector<16x128xf32>
    %c0_4 = arith.constant 0 : index
    %c0_5 = arith.constant 0 : index
    %6 = vector.load %arg4[%c0_4, %c0_5] : memref<1x128xf32, #tpu.memory_space<vmem>>, vector<1x128xf32>
    %7 = vector.broadcast %6 : vector<1x128xf32> to vector<16x128xf32>
    %8 = arith.addf %5, %7 : vector<16x128xf32>
    %c0_6 = arith.constant 0 : index
    %c0_7 = arith.constant 0 : index
    %9 = vector.load %arg6[%c0_6, %c0_7] : memref<16x1xf32, #tpu.memory_space<vmem>>, vector<16x1xf32>
    %cst_8 = arith.constant dense<0xFF800000> : vector<16xf32>
    %10 = vector.multi_reduction <maximumf>, %8, %cst_8 [1] : vector<16x128xf32> to vector<16xf32>
    %11 = vector.shape_cast %10 : vector<16xf32> to vector<16x1xf32>
    %12 = arith.maximumf %9, %11 : vector<16x1xf32>
    %c0_9 = arith.constant 0 : index
    %c0_10 = arith.constant 0 : index
    %13 = vector.load %arg7[%c0_9, %c0_10] : memref<16x1xf32, #tpu.memory_space<vmem>>, vector<16x1xf32>
    %14 = arith.subf %9, %12 : vector<16x1xf32>
    %15 = math.exp %14 : vector<16x1xf32>
    %16 = arith.mulf %13, %15 : vector<16x1xf32>
    %17 = vector.broadcast %12 : vector<16x1xf32> to vector<16x128xf32>
    %18 = arith.subf %8, %17 : vector<16x128xf32>
    %19 = math.exp %18 : vector<16x128xf32>
    %cst_11 = arith.constant dense<0.000000e+00> : vector<16xf32>
    %20 = vector.multi_reduction <add>, %19, %cst_11 [1] : vector<16x128xf32> to vector<16xf32>
    %21 = vector.shape_cast %20 : vector<16xf32> to vector<16x1xf32>
    %22 = arith.addf %16, %21 : vector<16x1xf32>
    %c0_12 = arith.constant 0 : index
    %c0_13 = arith.constant 0 : index
    %23 = vector.load %arg7[%c0_12, %c0_13] : memref<16x1xf32, #tpu.memory_space<vmem>>, vector<16x1xf32>
    tpu.vector_store %arg7[%c0_12, %c0_13], %22 {strides = array<i32>} : memref<16x1xf32, #tpu.memory_space<vmem>>, vector<16x1xf32>,
    %c0_14 = arith.constant 0 : index
    %c0_15 = arith.constant 0 : index
    %24 = vector.load %arg6[%c0_14, %c0_15] : memref<16x1xf32, #tpu.memory_space<vmem>>, vector<16x1xf32>
    tpu.vector_store %arg6[%c0_14, %c0_15], %12 {strides = array<i32>} : memref<16x1xf32, #tpu.memory_space<vmem>>, vector<16x1xf32>,
    %c0_i32_16 = arith.constant 0 : i32
    %25 = arith.cmpi eq, %arg1, %c0_i32_16 : i32
    %26 = arith.extui %25 : i1 to i32
    %c0_i32_17 = arith.constant 0 : i32
    %27 = arith.cmpi ne, %26, %c0_i32_17 : i32
    scf.if %27 {
      %c0_18 = arith.constant 0 : index
      %c0_19 = arith.constant 0 : index
      %28 = vector.load %arg6[%c0_18, %c0_19] : memref<16x1xf32, #tpu.memory_space<vmem>>, vector<16x1xf32>
      %c0_20 = arith.constant 0 : index
      %c0_21 = arith.constant 0 : index
      %29 = vector.load %arg7[%c0_20, %c0_21] : memref<16x1xf32, #tpu.memory_space<vmem>>, vector<16x1xf32>
      %30 = math.log %29 : vector<16x1xf32>
      %31 = arith.addf %28, %30 : vector<16x1xf32>
      %c0_22 = arith.constant 0 : index
      %c0_23 = arith.constant 0 : index
      %32 = vector.load %arg5[%c0_22, %c0_23] : memref<16x1xf32, #tpu.memory_space<vmem>>, vector<16x1xf32>
      tpu.vector_store %arg5[%c0_22, %c0_23], %31 {strides = array<i32>} : memref<16x1xf32, #tpu.memory_space<vmem>>, vector<16x1xf32>,
    } else {
    }
    return
  }
  func.func @transform_0(%arg0: i32, %arg1: i32) -> (i32, i32) {
    %c0_i32 = arith.constant 0 : i32
    %c0_i32_0 = arith.constant 0 : i32
    return %arg0, %c0_i32 : i32, i32
  }
  func.func @transform_1(%arg0: i32, %arg1: i32) -> (i32, i32) {
    %c0_i32 = arith.constant 0 : i32
    %c0_i32_0 = arith.constant 0 : i32
    return %c0_i32, %arg1 : i32, i32
  }
  func.func @transform_2(%arg0: i32, %arg1: i32) -> (i32, i32) {
    %c0_i32 = arith.constant 0 : i32
    %c0_i32_0 = arith.constant 0 : i32
    return %c0_i32, %arg1 : i32, i32
  }
  func.func @transform_3(%arg0: i32, %arg1: i32) -> (i32, i32) {
    %c0_i32 = arith.constant 0 : i32
    %c0_i32_0 = arith.constant 0 : i32
    return %arg0, %c0_i32 : i32, i32
  }
}

</mosaic_0001>

<bundles_post_ra>
// kernel: generator_forward.3
= control target key start
LH: loop header
LB: loop body
LE: loop exit
PB: predicated region body
PF: predicated region fallthrough
CT: control target
= control target key end

     0   :  { %v176_v1 = vmov 0.0   ;;  %vm177_vm0 = vmmov 0   ;;  %s237_s0 = inlined_call_operand.vmem [shape: bf16[16,32], index: 0, kind: input, shape index: {}]   ;;  %s238_s1 = inlined_call_operand.vmem [shape: bf16[32,128], index: 1, kind: input, shape index: {}]   ;;  %s239_s2 = inlined_call_operand.vmem [shape: f32[1,128], index: 2, kind: input, shape index: {}]   ;;  %s240_s3 = inlined_call_operand.vmem [shape: f32[16,1], index: 3, kind: input, shape index: {}]   ;;  %s241_s4 = inlined_call_operand.hbm [shape: f32[16,128], index: 4, kind: output, shape index: {}]  }
   0x1   :  { %v149_v0 = vld [vmem:[%s238_s1] sm:$0xff]   ;;  %134 = vmatprep.subr.bf16.mxu0 %v176_v1  ;;  %v150_v2 = vld [vmem:[%s238_s1 + $0x8] sm:$0xff]   ;;  %138 = vmatprep.mubr.msk.bf16.mxu0 %vm177_vm0, %v176_v1 }
   0x2   :  { %135 = vmatpush3.bf16.msra.mxu0 %v149_v0  ;;  %v94_v3 = vld [vmem:[%s240_s3] sm:$0xff] }
   0x3   :  { %136 = vmatprep.subr.bf16.mxu0 %v176_v1 }
   0x4   :  { %9 = vsyncpa [#allocation3], 0  ;;  %v178_v4 = vmov 0   ;;  %v151_v5 = vld [vmem:[%s237_s0] sm:$0xff]   ;;  %vm49_vm1 = vcmask 261120   ;;  %v95_v6 = vld [vmem:[%s240_s3 + $0x8] sm:$0xff] }
   0x5   :  { %148 = vset.pattern.permute.xlu0 %v178_v4  ;;  %v126_v8 = vld [vmem:[%s239_s2] ss:$0 sm:$0xff]  ;;  %s179_s26 = smov [#allocation2]  }
   0x6   :  { %98 = vperm.xlu0 %148, %v94_v3   ;;  %137 = vmatpush3.bf16.msra.mxu0 %v150_v2  ;;  %s115_s27 = sshll.u32 %s179_s26, 4  ;;  %s116_s27 = int_to_ptr.vmem [resolvable:$true] %s115_s27 }
   0x7   :  { %s152_s0 = scalar_lea.vmem %s116_s27, 256  ;;  %p157_p1 = scmp.lt.s32.totalorder %s116_s27, %s116_s27 }
   0x8   :  { %p153_p0 = scmp.ne.s32.totalorder %s116_s27, %s152_s0  ;;  %p158_p2 = scmp.lt.s32.totalorder %s152_s0, %s152_s0 }
   0x9   :  { %139 = vmatmul.mubr.msk.bf16.vlgmr.msra.gmra.mrb[0].mxu0 %vm49_vm1, %v151_v5 }
   0xa   :  { %103 = vperm.xlu0 %148, %v95_v6   ;;  %p159_p3 = por %p158_p2, %p157_p1 }
   0xc   :  { %p160_p4 = pnand %p159_p3, %p153_p0 }
  0x85   :  { %v99_v7 = vpop.permute.xlu0 %98 }
  0x89   :  { %v104_v16 = vpop.permute.xlu0 %103 }
  0xdc   :  { %v87_v9 = vpop.f32.mrb[0].mxu0 }
  0xdd   :  { %v88_v10 = vadd.f32 %v126_v8, %v87_v9  ;;  %v140_v11 = vpop.f32.mrb[1].mxu0 }
  0xde   :  { %v90_v12 = vpop.f32.mrb[2].mxu0 }
  0xdf   :  { %v106_v13 = vsub.f32 %v88_v10, %v99_v7  ;;  %v91_v14 = vadd.f32 %v126_v8, %v90_v12  ;;  %v141_v15 = vpop.f32.mrb[3].mxu0 }
  0xe1   :  { %108 = vst [vmem:[#allocation2] sm:$0xff] %v106_v13  ;;  %v107_v17 = vsub.f32 %v91_v14, %v104_v16 }
  0xe3   :  { %109 = vst [vmem:[#allocation2 + $0x8] sm:$0xff] %v107_v17 }
  0xe4   :  { %163 = shalt.err (!%p160_p4)
}
  0xe5   :  { %s164_s28 = scalar_lea.hbm %s241_s4, 256 }
  0xe6   :  { %p165_p5 = scmp.ne.s32.totalorder %s241_s4, %s164_s28  ;;  %p168_p6 = scmp.lt.u32.totalorder %s164_s28, %s241_s4 }
  0xe8   :  { %p170_p7 = pnand %p168_p6, %p165_p5 }
  0xea   :  { %173 = shalt.err (!%p170_p7)
}
  0xeb   :  { %s180_s7 = smov 128   ;;  %s181_s8 = smov 8  }
  0xec   :  { %121 = dma.vmem_to_hbm [thread:$0]  %s116_s27, 256, %s241_s4, [#allocation3], %s180_s7, %s180_s7, %s181_s8  }
  0xed   :  { %174 = dma.done.wait [#allocation3], 256  }
  0xee   :  { %175 = vsyncadd [#allocation3], 4294967040 }
  0xef   :  { %125 = vsyncpa [#allocation3], 1 }

// kernel: generator_forward.2
= control target key start
LH: loop header
LB: loop body
LE: loop exit
PB: predicated region body
PF: predicated region fallthrough
CT: control target
= control target key end

     0   :  { %v200_v0 = vmov 0.0   ;;  %vm201_vm0 = vmmov 0   ;;  %vm54_vm1 = vcmask 261120   ;;  %vm19_vm2 = vcmask 7168   ;;  %s252_s1 = inlined_call_operand.vmem [shape: bf16[32,128], index: 1, kind: input, shape index: {}]   ;;  %s253_s0 = inlined_call_operand.vmem [shape: bf16[16,32], index: 0, kind: input, shape index: {}]   ;;  %s254_s2 = inlined_call_operand.vmem [shape: f32[1,128], index: 2, kind: input, shape index: {}]   ;;  %s255_s3 = inlined_call_operand.vmem [shape: f32[16,1], index: 3, kind: output, shape index: {}]  }
   0x1   :  { %171 = vmatprep.subr.bf16.mxu0 %v200_v0  ;;  %v185_v1 = vld [vmem:[%s252_s1] sm:$0xff]   ;;  %175 = vmatprep.mubr.msk.bf16.mxu0 %vm201_vm0, %v200_v0  ;;  %v186_v2 = vld [vmem:[%s252_s1 + $0x8] sm:$0xff]   ;;  %v202_v4 = vmov -inf   ;;  %22 = vst.msk [vmem:[#allocation3] sm:$0xff] %vm19_vm2, %v200_v0  ;;  %23 = vst.msk [vmem:[#allocation3 + $0x8] sm:$0xff] %vm19_vm2, %v200_v0  ;;  %v203_v12 = vmov 0  }
   0x2   :  { %172 = vmatpush3.bf16.msra.mxu0 %v185_v1  ;;  %v187_v3 = vld [vmem:[%s253_s0] sm:$0xff]   ;;  %20 = vst.msk [vmem:[#allocation2] sm:$0xff] %vm19_vm2, %v202_v4  ;;  %21 = vst.msk [vmem:[#allocation2 + $0x8] sm:$0xff] %vm19_vm2, %v202_v4  ;;  %183 = vset.pattern.permute.xlu1 %v203_v12 }
   0x3   :  { %173 = vmatprep.subr.bf16.mxu0 %v200_v0  ;;  %v163_v5 = vld [vmem:[%s254_s2] ss:$0 sm:$0xff]  ;;  %184 = vset.pattern.permute.xlu0 %v203_v12 }
   0x6   :  { %174 = vmatpush3.bf16.msra.mxu0 %v186_v2 }
   0x8   :  { %v107_v32 = vld [vmem:[#allocation3] sm:$0xff]  ;;  %v108_v36 = vld [vmem:[#allocation3 + $0x8] sm:$0xff] }
   0x9   :  { %176 = vmatmul.mubr.msk.bf16.vlgmr.msra.gmra.mrb[0].mxu0 %vm54_vm1, %v187_v3  ;;  %v99_v13 = vld [vmem:[#allocation2] sm:$0xff]  ;;  %v100_v16 = vld [vmem:[#allocation2 + $0x8] sm:$0xff] }
  0xdc   :  { %v92_v6 = vpop.f32.mrb[0].mxu0 }
  0xdd   :  { %v93_v7 = vadd.f32 %v163_v5, %v92_v6  ;;  %v177_v8 = vpop.f32.mrb[1].mxu0 }
  0xde   :  { %v95_v9 = vpop.f32.mrb[2].mxu0 }
  0xdf   :  { %101 = vmax.xlane.f32.xlu0 %v93_v7  ;;  %v178_v10 = vpop.f32.mrb[3].mxu0  ;;  %v96_v11 = vadd.f32 %v163_v5, %v95_v9 }
  0xe3   :  { %103 = vmax.xlane.f32.xlu0 %v96_v11 }
 0x16c   :  { %v102_v14 = vpop.xlane.xlu0 %101 }
 0x16d   :  { %v105_v15 = vmax.f32 %v99_v13, %v102_v14 }
 0x16f   :  { %v109_v17 = vsub.f32 %v99_v13, %v105_v15  ;;  %142 = vst.msk [vmem:[#allocation2] sm:$0xff] %vm19_vm2, %v105_v15  ;;  %119 = vperm.xlu1 %183, %v105_v15  }
 0x170   :  { %v104_v18 = vpop.xlane.xlu0 %103 }
 0x171   :  { %v106_v19 = vmax.f32 %v100_v16, %v104_v18  ;;  %v111_v29 = vmul.f32 1.442695, %v109_v17 }
 0x173   :  { %v110_v20 = vsub.f32 %v100_v16, %v106_v19  ;;  %143 = vst.msk [vmem:[#allocation2 + $0x8] sm:$0xff] %vm19_vm2, %v106_v19  ;;  %124 = vperm.xlu1 %183, %v106_v19  }
 0x175   :  { %v113_v30 = vmul.f32 1.442695, %v110_v20 }
 0x176   :  { %v147_v45 = vld [vmem:[#allocation2] sm:$0xff] }
 0x17a   :  { %v148_v49 = vld [vmem:[#allocation2 + $0x8] sm:$0xff] }
 0x1ee   :  { %v120_v21 = vpop.permute.xlu1 %119 }
 0x1ef   :  { %v127_v22 = vsub.f32 %v93_v7, %v120_v21 }
 0x1f1   :  { %v129_v23 = vmul.f32 1.442695, %v127_v22 }
 0x1f2   :  { %v125_v24 = vpop.permute.xlu1 %124 }
 0x1f3   :  { %188 = vpow2.f32 %v129_v23  ;;  %v128_v25 = vsub.f32 %v96_v11, %v125_v24 }
 0x1f5   :  { %v131_v26 = vmul.f32 1.442695, %v128_v25 }
 0x1f7   :  { %190 = vpow2.f32 %v131_v26 }
 0x1f8   :  { %192 = vpow2.f32 %v111_v29 }
 0x1f9   :  { %194 = vpow2.f32 %v113_v30 }
 0x1fd   :  { %v189_v27 = vpop.eup %188 }
 0x1fe   :  { %133 = vadd.xlane.f32.xlu0 %v189_v27 }
 0x201   :  { %v191_v28 = vpop.eup %190 }
 0x202   :  { %135 = vadd.xlane.f32.xlu1 %v191_v28  ;;  %v193_v31 = vpop.eup %192 }
 0x203   :  { %v115_v33 = vmul.f32 %v193_v31, %v107_v32  ;;  %v195_v34 = vpop.eup %194 }
 0x204   :  { %v116_v38 = vmul.f32 %v195_v34, %v108_v36 }
 0x28b   :  { %v134_v35 = vpop.xlane.xlu0 %133 }
 0x28c   :  { %v137_v37 = vadd.f32 %v134_v35, %v115_v33 }
 0x28e   :  { %140 = vst.msk [vmem:[#allocation3] sm:$0xff] %vm19_vm2, %v137_v37 }
 0x28f   :  { %v136_v39 = vpop.xlane.xlu1 %135 }
 0x290   :  { %v138_v40 = vadd.f32 %v136_v39, %v116_v38 }
 0x292   :  { %141 = vst.msk [vmem:[#allocation3 + $0x8] sm:$0xff] %vm19_vm2, %v138_v40 }
 0x295   :  { %v149_v41 = vld [vmem:[#allocation3] sm:$0xff] }
 0x296   :  { %196 = vlog2.f32 %v149_v41 }
 0x299   :  { %v150_v42 = vld [vmem:[#allocation3 + $0x8] sm:$0xff] }
 0x29a   :  { %198 = vlog2.f32 %v150_v42 }
 0x2a0   :  { %v197_v43 = vpop.eup %196 }
 0x2a1   :  { %v152_v44 = vmul.f32 0.6931472, %v197_v43 }
 0x2a3   :  { %v155_v46 = vadd.f32 %v152_v44, %v147_v45 }
 0x2a4   :  { %v199_v47 = vpop.eup %198 }
 0x2a5   :  { %157 = vst.msk [vmem:[%s255_s3] sm:$0xff] %vm19_vm2, %v155_v46  ;;  %v154_v48 = vmul.f32 0.6931472, %v199_v47 }
 0x2a7   :  { %v156_v50 = vadd.f32 %v154_v48, %v148_v49 }
 0x2a9   :  { %158 = vst.msk [vmem:[%s255_s3 + $0x8] sm:$0xff] %vm19_vm2, %v156_v50 }

</bundles_post_ra>
